<compile_context>
chip_gen: v6e
topology: v6e:2x2x1
jax: 0.10.0
libtpu: 0.0.40
codegen_flags: <defaults>
</compile_context>

<pallas_src>
import functools

import jax
import jax.numpy as jnp
from jax import lax
from jax.experimental import pallas as pl
from jax.experimental.pallas import tpu as pltpu

_LANE = 128
_SUBLANE = 8


def _round_up(x, m):
    return ((x + m - 1) // m) * m


def _gelu_exact(x):
    # Matches torch.nn.GELU() default (erf formulation); computed in f32.
    return 0.5 * x * (1.0 + lax.erf(x * (1.0 / jnp.sqrt(2.0).astype(x.dtype))))


def _mlp_kernel(n_linear, mxu_dtype, *refs):
    # refs layout: x_ref, (w_ref, b_ref) * n_linear, o_ref
    x_ref = refs[0]
    o_ref = refs[-1]
    wb_refs = refs[1:-1]

    h = x_ref[...].astype(mxu_dtype)          # bf16 operand for the MXU
    for li in range(n_linear):
        w = wb_refs[2 * li][...]              # bf16 (padded, lane-dense)
        b = wb_refs[2 * li + 1][...]          # f32 (1, out) row
        acc = jnp.dot(h, w, preferred_element_type=jnp.float32)
        acc = acc + b.astype(jnp.float32)
        if li < n_linear - 1:
            acc = _gelu_exact(acc)            # activation after all but last Linear
            h = acc.astype(mxu_dtype)
        else:
            h = acc
    o_ref[...] = h.astype(o_ref.dtype)


def mlp_forward(x, weights, biases, *, tile_b=None, mxu_dtype=jnp.bfloat16):
    """Fused MLP forward.

    x:       (B, input_size)
    weights: list of (in_i, out_i) matrices (already transposed vs. torch)
    biases:  list of (out_i,) vectors
    """
    B, in_dim = x.shape
    n_linear = len(weights)
    out_dim = weights[-1].shape[1]
    out_dtype = x.dtype

    # ------- lane-dense feature padding (multiples of 128) -----------------
    dims = [in_dim] + [w.shape[1] for w in weights]
    pdims = [_round_up(d, _LANE) for d in dims]

    w_pad, b_pad = [], []
    for li, (w, b) in enumerate(zip(weights, biases)):
        din, dout = w.shape
        pin, pout = pdims[li], pdims[li + 1]
        wp = jnp.zeros((pin, pout), mxu_dtype).at[:din, :dout].set(
            w.astype(mxu_dtype))
        bp = jnp.zeros((1, pout), jnp.float32).at[0, :dout].set(
            b.astype(jnp.float32))
        w_pad.append(wp)
        b_pad.append(bp)

    # ------- batch tiling ---------------------------------------------------
    b8 = _round_up(B, _SUBLANE)
    if tile_b is None:
        tile_b = min(512, b8)
        # Prefer >= 2 grid steps when the batch is big enough: enables DMA
        # pipelining and megacore sharding of the "parallel" axis (v7x).
        if b8 >= 2 * _SUBLANE and b8 // tile_b < 2:
            tile_b = _round_up(pl.cdiv(b8, 2), _SUBLANE)
    tile_b = max(_SUBLANE, _round_up(int(tile_b), _SUBLANE))
    grid_b = pl.cdiv(B, tile_b)
    B_pad = grid_b * tile_b

    xp = jnp.zeros((B_pad, pdims[0]), mxu_dtype).at[:B, :in_dim].set(
        x.astype(mxu_dtype))

    # ------- VMEM budget / cost estimate ------------------------------------
    mxu_bytes = jnp.dtype(mxu_dtype).itemsize
    w_bytes = sum(w.size * mxu_bytes for w in w_pad)
    b_bytes = sum(b.size * 4 for b in b_pad)
    vmem_need = (2 * tile_b * pdims[0] * mxu_bytes      # x tile, double-buffered
                 + 2 * w_bytes + 2 * b_bytes            # params (worst case x2)
                 + 2 * tile_b * pdims[-1] * 4           # out tile, double-buffered
                 + 3 * tile_b * max(pdims) * 4)         # f32 intermediates headroom
    vmem_limit = int(min(64 * 1024 * 1024,
                         max(2 * vmem_need, 16 * 1024 * 1024)))

    flops = 2 * B_pad * sum(pdims[i] * pdims[i + 1] for i in range(n_linear))
    transcendentals = B_pad * sum(pdims[i + 1] for i in range(n_linear - 1))
    bytes_accessed = (xp.size * mxu_bytes + w_bytes + b_bytes
                      + B_pad * pdims[-1] * jnp.dtype(out_dtype).itemsize)

    kernel = functools.partial(_mlp_kernel, n_linear, mxu_dtype)

    def build_call(single_buffer_params):
        in_specs = [pl.BlockSpec((tile_b, pdims[0]), lambda i: (i, 0))]
        for wp, bp in zip(w_pad, b_pad):
            if single_buffer_params:
                # Grid-invariant -> fetched once; single buffer halves VMEM use.
                in_specs.append(pl.BlockSpec(wp.shape, lambda i: (0, 0),
                                             pipeline_mode=pl.Buffered(1)))
                in_specs.append(pl.BlockSpec(bp.shape, lambda i: (0, 0),
                                             pipeline_mode=pl.Buffered(1)))
            else:
                in_specs.append(pl.BlockSpec(wp.shape, lambda i: (0, 0)))
                in_specs.append(pl.BlockSpec(bp.shape, lambda i: (0, 0)))
        out_spec = pl.BlockSpec((tile_b, pdims[-1]), lambda i: (i, 0))
        return pl.pallas_call(
            kernel,
            out_shape=jax.ShapeDtypeStruct((B_pad, pdims[-1]), out_dtype),
            grid=(grid_b,),
            in_specs=in_specs,
            out_specs=out_spec,
            compiler_params=pltpu.CompilerParams(
                dimension_semantics=("parallel",),
                vmem_limit_bytes=vmem_limit),
            cost_estimate=pl.CostEstimate(
                flops=flops,
                transcendentals=transcendentals,
                bytes_accessed=bytes_accessed),
        )

    args = [xp]
    for wp, bp in zip(w_pad, b_pad):
        args.append(wp)
        args.append(bp)

    use_single_buffer = hasattr(pl, "Buffered")
    if use_single_buffer:
        try:
            out = build_call(True)(*args)
        except Exception:
            out = build_call(False)(*args)
    else:
        out = build_call(False)(*args)

    return out[:B, :out_dim]


def init_mlp_params(key, input_size, hidden_size, output_size, num_layers=1):
    """Parameter init mirroring the torch module's layer shapes.

    Returns weights as (in, out) matrices (i.e. torch W.T) and biases (out,).
    """
    dims = [(input_size, hidden_size)]
    for _ in range(num_layers):
        dims.append((hidden_size, hidden_size))
    dims.append((hidden_size, output_size))

    weights, biases = [], []
    for (din, dout) in dims:
        key, kw, kb = jax.random.split(key, 3)
        bound = 1.0 / jnp.sqrt(din)
        w = jax.random.uniform(kw, (din, dout), jnp.float32, -bound, bound)
        b = jax.random.uniform(kb, (dout,), jnp.float32, -bound, bound)
        weights.append(w)
        biases.append(b)
    return weights, biases


def mlp_reference(x, weights, biases, mxu_dtype=jnp.bfloat16):
    """Pure-JAX reference mirroring the kernel's numerics (bf16 MXU, f32 acc)."""
    h = x.astype(mxu_dtype)
    n = len(weights)
    for i, (w, b) in enumerate(zip(weights, biases)):
        acc = jnp.dot(h.astype(mxu_dtype), w.astype(mxu_dtype),
                      preferred_element_type=jnp.float32)
        acc = acc + b.astype(jnp.float32)
        if i < n - 1:
            acc = jax.nn.gelu(acc, approximate=False)
            h = acc.astype(mxu_dtype)
        else:
            h = acc
    return h.astype(x.dtype)


if __name__ == "__main__":
    # Small shapes consistent with the module: MLP(input_size=16, hidden_size=32,
    # output_size=8, num_layers=1, act='gelu', batch_norm=False); batch=8.
    B, input_size, hidden_size, output_size, num_layers = 8, 16, 32, 8, 1

    key = jax.random.PRNGKey(0)
    key, kx = jax.random.split(key)
    x = jax.random.normal(kx, (B, input_size), jnp.float32)

    weights, biases = init_mlp_params(
        key, input_size, hidden_size, output_size, num_layers)

    out = mlp_forward(x, weights, biases)
    out = jax.block_until_ready(out)

    ref = mlp_reference(x, weights, biases)
    assert out.shape == (B, output_size)
    assert jnp.allclose(out, ref, atol=2e-3, rtol=2e-3), (
        f"max abs err {jnp.max(jnp.abs(out - ref))}")

    print("KERNEL_OK")
</pallas_src>

<mosaic_0001>
module attributes {stable_mosaic.version = 11 : i64} {
  func.func @_mlp_kernel(%arg0: i32, %arg1: memref<8x128xbf16, #tpu.memory_space<vmem>>, %arg2: memref<128x128xbf16, #tpu.memory_space<vmem>>, %arg3: memref<1x128xf32, #tpu.memory_space<vmem>>, %arg4: memref<128x128xbf16, #tpu.memory_space<vmem>>, %arg5: memref<1x128xf32, #tpu.memory_space<vmem>>, %arg6: memref<128x128xbf16, #tpu.memory_space<vmem>>, %arg7: memref<1x128xf32, #tpu.memory_space<vmem>>, %arg8: memref<8x128xf32, #tpu.memory_space<vmem>>) attributes {dimension_semantics = [#tpu.dimension_semantics<parallel>], iteration_bounds = array<i64: 1>, scalar_prefetch = 0 : i64, scratch_operands = 0 : i64, tpu.core_type = #tpu.core_type<tc>, window_params = [{transform_indices = @transform_0, window_bounds = array<i64: 8, 128>}, {pipeline_mode = #tpu.pipeline_mode<synchronous>, transform_indices = @transform_1, window_bounds = array<i64: 128, 128>}, {pipeline_mode = #tpu.pipeline_mode<synchronous>, transform_indices = @transform_2, window_bounds = array<i64: 1, 128>}, {pipeline_mode = #tpu.pipeline_mode<synchronous>, transform_indices = @transform_3, window_bounds = array<i64: 128, 128>}, {pipeline_mode = #tpu.pipeline_mode<synchronous>, transform_indices = @transform_4, window_bounds = array<i64: 1, 128>}, {pipeline_mode = #tpu.pipeline_mode<synchronous>, transform_indices = @transform_5, window_bounds = array<i64: 128, 128>}, {pipeline_mode = #tpu.pipeline_mode<synchronous>, transform_indices = @transform_6, window_bounds = array<i64: 1, 128>}, {transform_indices = @transform_7, window_bounds = array<i64: 8, 128>}]} {
    %c0 = arith.constant 0 : index
    %c0_0 = arith.constant 0 : index
    %0 = vector.load %arg1[%c0, %c0_0] : memref<8x128xbf16, #tpu.memory_space<vmem>>, vector<8x128xbf16>
    %c0_1 = arith.constant 0 : index
    %c0_2 = arith.constant 0 : index
    %1 = vector.load %arg2[%c0_1, %c0_2] : memref<128x128xbf16, #tpu.memory_space<vmem>>, vector<128x128xbf16>
    %c0_3 = arith.constant 0 : index
    %c0_4 = arith.constant 0 : index
    %2 = vector.load %arg3[%c0_3, %c0_4] : memref<1x128xf32, #tpu.memory_space<vmem>>, vector<1x128xf32>
    %cst = arith.constant dense<0.000000e+00> : vector<8x128xf32>
    %3 = tpu.matmul %0, %1, %cst {dimension_numbers = #tpu.dot_dimension_numbers<[1], [0], [0], [1], [0, 0, 1, 1], [], []>} : vector<8x128xbf16>, vector<128x128xbf16>, vector<8x128xf32> -> vector<8x128xf32>
    %4 = vector.broadcast %2 : vector<1x128xf32> to vector<8x128xf32>
    %5 = arith.addf %3, %4 : vector<8x128xf32>
    %cst_5 = arith.constant 5.000000e-01 : f32
    %6 = vector.broadcast %cst_5 : f32 to vector<8x128xf32>
    %7 = arith.mulf %6, %5 : vector<8x128xf32>
    %cst_6 = arith.constant 2.000000e+00 : f32
    %8 = math.sqrt %cst_6 : f32
    %cst_7 = arith.constant 1.000000e+00 : f32
    %9 = arith.divf %cst_7, %8 : f32
    %10 = vector.broadcast %9 : f32 to vector<8x128xf32>
    %11 = arith.mulf %5, %10 : vector<8x128xf32>
    %12 = math.erf %11 : vector<8x128xf32>
    %cst_8 = arith.constant 1.000000e+00 : f32
    %13 = vector.broadcast %cst_8 : f32 to vector<8x128xf32>
    %14 = arith.addf %13, %12 : vector<8x128xf32>
    %15 = arith.mulf %7, %14 : vector<8x128xf32>
    %16 = arith.truncf %15 : vector<8x128xf32> to vector<8x128xbf16>
    %c0_9 = arith.constant 0 : index
    %c0_10 = arith.constant 0 : index
    %17 = vector.load %arg4[%c0_9, %c0_10] : memref<128x128xbf16, #tpu.memory_space<vmem>>, vector<128x128xbf16>
    %c0_11 = arith.constant 0 : index
    %c0_12 = arith.constant 0 : index
    %18 = vector.load %arg5[%c0_11, %c0_12] : memref<1x128xf32, #tpu.memory_space<vmem>>, vector<1x128xf32>
    %cst_13 = arith.constant dense<0.000000e+00> : vector<8x128xf32>
    %19 = tpu.matmul %16, %17, %cst_13 {dimension_numbers = #tpu.dot_dimension_numbers<[1], [0], [0], [1], [0, 0, 1, 1], [], []>} : vector<8x128xbf16>, vector<128x128xbf16>, vector<8x128xf32> -> vector<8x128xf32>
    %20 = vector.broadcast %18 : vector<1x128xf32> to vector<8x128xf32>
    %21 = arith.addf %19, %20 : vector<8x128xf32>
    %cst_14 = arith.constant 5.000000e-01 : f32
    %22 = vector.broadcast %cst_14 : f32 to vector<8x128xf32>
    %23 = arith.mulf %22, %21 : vector<8x128xf32>
    %cst_15 = arith.constant 2.000000e+00 : f32
    %24 = math.sqrt %cst_15 : f32
    %cst_16 = arith.constant 1.000000e+00 : f32
    %25 = arith.divf %cst_16, %24 : f32
    %26 = vector.broadcast %25 : f32 to vector<8x128xf32>
    %27 = arith.mulf %21, %26 : vector<8x128xf32>
    %28 = math.erf %27 : vector<8x128xf32>
    %cst_17 = arith.constant 1.000000e+00 : f32
    %29 = vector.broadcast %cst_17 : f32 to vector<8x128xf32>
    %30 = arith.addf %29, %28 : vector<8x128xf32>
    %31 = arith.mulf %23, %30 : vector<8x128xf32>
    %32 = arith.truncf %31 : vector<8x128xf32> to vector<8x128xbf16>
    %c0_18 = arith.constant 0 : index
    %c0_19 = arith.constant 0 : index
    %33 = vector.load %arg6[%c0_18, %c0_19] : memref<128x128xbf16, #tpu.memory_space<vmem>>, vector<128x128xbf16>
    %c0_20 = arith.constant 0 : index
    %c0_21 = arith.constant 0 : index
    %34 = vector.load %arg7[%c0_20, %c0_21] : memref<1x128xf32, #tpu.memory_space<vmem>>, vector<1x128xf32>
    %cst_22 = arith.constant dense<0.000000e+00> : vector<8x128xf32>
    %35 = tpu.matmul %32, %33, %cst_22 {dimension_numbers = #tpu.dot_dimension_numbers<[1], [0], [0], [1], [0, 0, 1, 1], [], []>} : vector<8x128xbf16>, vector<128x128xbf16>, vector<8x128xf32> -> vector<8x128xf32>
    %36 = vector.broadcast %34 : vector<1x128xf32> to vector<8x128xf32>
    %37 = arith.addf %35, %36 : vector<8x128xf32>
    %c0_23 = arith.constant 0 : index
    %c0_24 = arith.constant 0 : index
    %38 = vector.load %arg8[%c0_23, %c0_24] : memref<8x128xf32, #tpu.memory_space<vmem>>, vector<8x128xf32>
    tpu.vector_store %arg8[%c0_23, %c0_24], %37 {strides = array<i32>} : memref<8x128xf32, #tpu.memory_space<vmem>>, vector<8x128xf32>,
    return
  }
  func.func @transform_0(%arg0: i32) -> (i32, i32) {
    %c0_i32 = arith.constant 0 : i32
    %c0_i32_0 = arith.constant 0 : i32
    return %arg0, %c0_i32 : i32, i32
  }
  func.func @transform_1(%arg0: i32) -> (i32, i32) {
    %c0_i32 = arith.constant 0 : i32
    %c0_i32_0 = arith.constant 0 : i32
    %c0_i32_1 = arith.constant 0 : i32
    return %c0_i32, %c0_i32_0 : i32, i32
  }
  func.func @transform_2(%arg0: i32) -> (i32, i32) {
    %c0_i32 = arith.constant 0 : i32
    %c0_i32_0 = arith.constant 0 : i32
    %c0_i32_1 = arith.constant 0 : i32
    return %c0_i32, %c0_i32_0 : i32, i32
  }
  func.func @transform_3(%arg0: i32) -> (i32, i32) {
    %c0_i32 = arith.constant 0 : i32
    %c0_i32_0 = arith.constant 0 : i32
    %c0_i32_1 = arith.constant 0 : i32
    return %c0_i32, %c0_i32_0 : i32, i32
  }
  func.func @transform_4(%arg0: i32) -> (i32, i32) {
    %c0_i32 = arith.constant 0 : i32
    %c0_i32_0 = arith.constant 0 : i32
    %c0_i32_1 = arith.constant 0 : i32
    return %c0_i32, %c0_i32_0 : i32, i32
  }
  func.func @transform_5(%arg0: i32) -> (i32, i32) {
    %c0_i32 = arith.constant 0 : i32
    %c0_i32_0 = arith.constant 0 : i32
    %c0_i32_1 = arith.constant 0 : i32
    return %c0_i32, %c0_i32_0 : i32, i32
  }
  func.func @transform_6(%arg0: i32) -> (i32, i32) {
    %c0_i32 = arith.constant 0 : i32
    %c0_i32_0 = arith.constant 0 : i32
    %c0_i32_1 = arith.constant 0 : i32
    return %c0_i32, %c0_i32_0 : i32, i32
  }
  func.func @transform_7(%arg0: i32) -> (i32, i32) {
    %c0_i32 = arith.constant 0 : i32
    %c0_i32_0 = arith.constant 0 : i32
    return %arg0, %c0_i32 : i32, i32
  }
}

module attributes {stable_mosaic.version = 11 : i64} {
  func.func @_mlp_kernel(%arg0: i32, %arg1: memref<8x128xbf16, #tpu.memory_space<vmem>>, %arg2: memref<128x128xbf16, #tpu.memory_space<vmem>>, %arg3: memref<1x128xf32, #tpu.memory_space<vmem>>, %arg4: memref<128x128xbf16, #tpu.memory_space<vmem>>, %arg5: memref<1x128xf32, #tpu.memory_space<vmem>>, %arg6: memref<128x128xbf16, #tpu.memory_space<vmem>>, %arg7: memref<1x128xf32, #tpu.memory_space<vmem>>, %arg8: memref<8x128xf32, #tpu.memory_space<vmem>>) attributes {dimension_semantics = [#tpu.dimension_semantics<parallel>], iteration_bounds = array<i64: 1>, scalar_prefetch = 0 : i64, scratch_operands = 0 : i64, tpu.core_type = #tpu.core_type<tc>, window_params = [{transform_indices = @transform_0, window_bounds = array<i64: 8, 128>}, {pipeline_mode = #tpu.pipeline_mode<synchronous>, transform_indices = @transform_1, window_bounds = array<i64: 128, 128>}, {pipeline_mode = #tpu.pipeline_mode<synchronous>, transform_indices = @transform_2, window_bounds = array<i64: 1, 128>}, {pipeline_mode = #tpu.pipeline_mode<synchronous>, transform_indices = @transform_3, window_bounds = array<i64: 128, 128>}, {pipeline_mode = #tpu.pipeline_mode<synchronous>, transform_indices = @transform_4, window_bounds = array<i64: 1, 128>}, {pipeline_mode = #tpu.pipeline_mode<synchronous>, transform_indices = @transform_5, window_bounds = array<i64: 128, 128>}, {pipeline_mode = #tpu.pipeline_mode<synchronous>, transform_indices = @transform_6, window_bounds = array<i64: 1, 128>}, {transform_indices = @transform_7, window_bounds = array<i64: 8, 128>}]} {
    %c0 = arith.constant 0 : index
    %c0_0 = arith.constant 0 : index
    %0 = vector.load %arg1[%c0, %c0_0] : memref<8x128xbf16, #tpu.memory_space<vmem>>, vector<8x128xbf16>
    %c0_1 = arith.constant 0 : index
    %c0_2 = arith.constant 0 : index
    %1 = vector.load %arg2[%c0_1, %c0_2] : memref<128x128xbf16, #tpu.memory_space<vmem>>, vector<128x128xbf16>
    %c0_3 = arith.constant 0 : index
    %c0_4 = arith.constant 0 : index
    %2 = vector.load %arg3[%c0_3, %c0_4] : memref<1x128xf32, #tpu.memory_space<vmem>>, vector<1x128xf32>
    %cst = arith.constant dense<0.000000e+00> : vector<8x128xf32>
    %3 = tpu.matmul %0, %1, %cst {dimension_numbers = #tpu.dot_dimension_numbers<[1], [0], [0], [1], [0, 0, 1, 1], [], []>} : vector<8x128xbf16>, vector<128x128xbf16>, vector<8x128xf32> -> vector<8x128xf32>
    %4 = vector.broadcast %2 : vector<1x128xf32> to vector<8x128xf32>
    %5 = arith.addf %3, %4 : vector<8x128xf32>
    %cst_5 = arith.constant 5.000000e-01 : f32
    %6 = vector.broadcast %cst_5 : f32 to vector<8x128xf32>
    %7 = arith.mulf %6, %5 : vector<8x128xf32>
    %cst_6 = arith.constant 2.000000e+00 : f32
    %8 = math.sqrt %cst_6 : f32
    %cst_7 = arith.constant 1.000000e+00 : f32
    %9 = arith.divf %cst_7, %8 : f32
    %10 = vector.broadcast %9 : f32 to vector<8x128xf32>
    %11 = arith.mulf %5, %10 : vector<8x128xf32>
    %12 = math.erf %11 : vector<8x128xf32>
    %cst_8 = arith.constant 1.000000e+00 : f32
    %13 = vector.broadcast %cst_8 : f32 to vector<8x128xf32>
    %14 = arith.addf %13, %12 : vector<8x128xf32>
    %15 = arith.mulf %7, %14 : vector<8x128xf32>
    %16 = arith.truncf %15 : vector<8x128xf32> to vector<8x128xbf16>
    %c0_9 = arith.constant 0 : index
    %c0_10 = arith.constant 0 : index
    %17 = vector.load %arg4[%c0_9, %c0_10] : memref<128x128xbf16, #tpu.memory_space<vmem>>, vector<128x128xbf16>
    %c0_11 = arith.constant 0 : index
    %c0_12 = arith.constant 0 : index
    %18 = vector.load %arg5[%c0_11, %c0_12] : memref<1x128xf32, #tpu.memory_space<vmem>>, vector<1x128xf32>
    %cst_13 = arith.constant dense<0.000000e+00> : vector<8x128xf32>
    %19 = tpu.matmul %16, %17, %cst_13 {dimension_numbers = #tpu.dot_dimension_numbers<[1], [0], [0], [1], [0, 0, 1, 1], [], []>} : vector<8x128xbf16>, vector<128x128xbf16>, vector<8x128xf32> -> vector<8x128xf32>
    %20 = vector.broadcast %18 : vector<1x128xf32> to vector<8x128xf32>
    %21 = arith.addf %19, %20 : vector<8x128xf32>
    %cst_14 = arith.constant 5.000000e-01 : f32
    %22 = vector.broadcast %cst_14 : f32 to vector<8x128xf32>
    %23 = arith.mulf %22, %21 : vector<8x128xf32>
    %cst_15 = arith.constant 2.000000e+00 : f32
    %24 = math.sqrt %cst_15 : f32
    %cst_16 = arith.constant 1.000000e+00 : f32
    %25 = arith.divf %cst_16, %24 : f32
    %26 = vector.broadcast %25 : f32 to vector<8x128xf32>
    %27 = arith.mulf %21, %26 : vector<8x128xf32>
    %28 = math.erf %27 : vector<8x128xf32>
    %cst_17 = arith.constant 1.000000e+00 : f32
    %29 = vector.broadcast %cst_17 : f32 to vector<8x128xf32>
    %30 = arith.addf %29, %28 : vector<8x128xf32>
    %31 = arith.mulf %23, %30 : vector<8x128xf32>
    %32 = arith.truncf %31 : vector<8x128xf32> to vector<8x128xbf16>
    %c0_18 = arith.constant 0 : index
    %c0_19 = arith.constant 0 : index
    %33 = vector.load %arg6[%c0_18, %c0_19] : memref<128x128xbf16, #tpu.memory_space<vmem>>, vector<128x128xbf16>
    %c0_20 = arith.constant 0 : index
    %c0_21 = arith.constant 0 : index
    %34 = vector.load %arg7[%c0_20, %c0_21] : memref<1x128xf32, #tpu.memory_space<vmem>>, vector<1x128xf32>
    %cst_22 = arith.constant dense<0.000000e+00> : vector<8x128xf32>
    %35 = tpu.matmul %32, %33, %cst_22 {dimension_numbers = #tpu.dot_dimension_numbers<[1], [0], [0], [1], [0, 0, 1, 1], [], []>} : vector<8x128xbf16>, vector<128x128xbf16>, vector<8x128xf32> -> vector<8x128xf32>
    %36 = vector.broadcast %34 : vector<1x128xf32> to vector<8x128xf32>
    %37 = arith.addf %35, %36 : vector<8x128xf32>
    %c0_23 = arith.constant 0 : index
    %c0_24 = arith.constant 0 : index
    %38 = vector.load %arg8[%c0_23, %c0_24] : memref<8x128xf32, #tpu.memory_space<vmem>>, vector<8x128xf32>
    tpu.vector_store %arg8[%c0_23, %c0_24], %37 {strides = array<i32>} : memref<8x128xf32, #tpu.memory_space<vmem>>, vector<8x128xf32>,
    return
  }
  func.func @transform_0(%arg0: i32) -> (i32, i32) {
    %c0_i32 = arith.constant 0 : i32
    %c0_i32_0 = arith.constant 0 : i32
    return %arg0, %c0_i32 : i32, i32
  }
  func.func @transform_1(%arg0: i32) -> (i32, i32) {
    %c0_i32 = arith.constant 0 : i32
    %c0_i32_0 = arith.constant 0 : i32
    %c0_i32_1 = arith.constant 0 : i32
    return %c0_i32, %c0_i32_0 : i32, i32
  }
  func.func @transform_2(%arg0: i32) -> (i32, i32) {
    %c0_i32 = arith.constant 0 : i32
    %c0_i32_0 = arith.constant 0 : i32
    %c0_i32_1 = arith.constant 0 : i32
    return %c0_i32, %c0_i32_0 : i32, i32
  }
  func.func @transform_3(%arg0: i32) -> (i32, i32) {
    %c0_i32 = arith.constant 0 : i32
    %c0_i32_0 = arith.constant 0 : i32
    %c0_i32_1 = arith.constant 0 : i32
    return %c0_i32, %c0_i32_0 : i32, i32
  }
  func.func @transform_4(%arg0: i32) -> (i32, i32) {
    %c0_i32 = arith.constant 0 : i32
    %c0_i32_0 = arith.constant 0 : i32
    %c0_i32_1 = arith.constant 0 : i32
    return %c0_i32, %c0_i32_0 : i32, i32
  }
  func.func @transform_5(%arg0: i32) -> (i32, i32) {
    %c0_i32 = arith.constant 0 : i32
    %c0_i32_0 = arith.constant 0 : i32
    %c0_i32_1 = arith.constant 0 : i32
    return %c0_i32, %c0_i32_0 : i32, i32
  }
  func.func @transform_6(%arg0: i32) -> (i32, i32) {
    %c0_i32 = arith.constant 0 : i32
    %c0_i32_0 = arith.constant 0 : i32
    %c0_i32_1 = arith.constant 0 : i32
    return %c0_i32, %c0_i32_0 : i32, i32
  }
  func.func @transform_7(%arg0: i32) -> (i32, i32) {
    %c0_i32 = arith.constant 0 : i32
    %c0_i32_0 = arith.constant 0 : i32
    return %arg0, %c0_i32 : i32, i32
  }
}

</mosaic_0001>

<bundles_post_ra>
// kernel: tpu_custom_call.1
= control target key start
LH: loop header
LB: loop body
LE: loop exit
PB: predicated region body
PF: predicated region fallthrough
CT: control target
= control target key end

     0   :  { %12 = vsyncpa [#allocation3], 0  ;;  %s816_s0 = inlined_call_operand.hbm [shape: bf16[8,128], index: 0, kind: input, shape index: {}]   ;;  %s817_s1 = inlined_call_operand.hbm [shape: bf16[128,128], index: 1, kind: input, shape index: {}]   ;;  %s818_s2 = inlined_call_operand.vmem [shape: f32[1,128], index: 2, kind: input, shape index: {}]   ;;  %s819_s3 = inlined_call_operand.hbm [shape: bf16[128,128], index: 3, kind: input, shape index: {}]   ;;  %s820_s4 = inlined_call_operand.vmem [shape: f32[1,128], index: 4, kind: input, shape index: {}]   ;;  %s821_s5 = inlined_call_operand.hbm [shape: bf16[128,128], index: 5, kind: input, shape index: {}]   ;;  %s822_s6 = inlined_call_operand.vmem [shape: f32[1,128], index: 6, kind: input, shape index: {}]   ;;  %s823_s7 = inlined_call_operand.hbm [shape: f32[8,128], index: 7, kind: output, shape index: {}]  }
   0x1   :  { %13 = vsyncpa [#allocation6], 0 }
   0x2   :  { %14 = vsyncpa [#allocation9], 0 }
   0x3   :  { %15 = vsyncpa [#allocation4], 0  ;;  %s704_s24 = smov [#allocation5]  }
   0x4   :  { %s31_s25 = sshll.u32 %s704_s24, 4  ;;  %s32_s25 = int_to_ptr.vmem [resolvable:$true] %s31_s25 }
   0x5   :  { %s604_s26 = scalar_lea.vmem %s32_s25, 1024  ;;  %p609_p1 = scmp.lt.s32.totalorder %s32_s25, %s32_s25 }
   0x6   :  { %p605_p0 = scmp.ne.s32.totalorder %s32_s25, %s604_s26  ;;  %p610_p2 = scmp.lt.s32.totalorder %s604_s26, %s604_s26 }
   0x8   :  { %p611_p3 = por %p610_p2, %p609_p1 }
   0xa   :  { %p612_p4 = pnand %p611_p3, %p605_p0 }
   0xc   :  { %615 = shalt.err (!%p612_p4)
}
   0xd   :  { %s705_s27 = smov 64   ;;  %s706_s28 = smov 4  }
   0xe   :  { %37 = dma.hbm_to_vmem [thread:$0]  %s817_s1, 1024, %s32_s25, [#allocation6], %s705_s27, %s705_s27, %s706_s28  }
   0xf   :  { %s707_s8 = smov [#allocation2]   ;;  %s708_s10 = smov [#allocation7]  }
  0x10   :  { %s22_s9 = sshll.u32 %s707_s8, 4  ;;  %s45_s11 = sshll.u32 %s708_s10, 4  ;;  %s23_s9 = int_to_ptr.vmem [resolvable:$true] %s22_s9  ;;  %s46_s11 = int_to_ptr.vmem [resolvable:$true] %s45_s11 }
  0x11   :  { %s624_s12 = scalar_lea.vmem %s23_s9, 64  ;;  %p629_p6 = scmp.lt.s32.totalorder %s23_s9, %s23_s9 }
  0x12   :  { %p625_p5 = scmp.ne.s32.totalorder %s23_s9, %s624_s12  ;;  %p630_p7 = scmp.lt.s32.totalorder %s624_s12, %s624_s12 }
  0x14   :  { %p631_p8 = por %p630_p7, %p629_p6 }
  0x16   :  { %p632_p9 = pnand %p631_p8, %p625_p5 }
  0x18   :  { %635 = shalt.err (!%p632_p9)
}
  0x19   :  { %25 = dma.hbm_to_vmem [thread:$0]  %s816_s0, 64, %s23_s9, [#allocation3]  }
  0x1a   :  { %s644_s15 = scalar_lea.vmem %s46_s11, 1024  ;;  %p649_p11 = scmp.lt.s32.totalorder %s46_s11, %s46_s11 }
  0x1b   :  { %p645_p10 = scmp.ne.s32.totalorder %s46_s11, %s644_s15  ;;  %p650_p12 = scmp.lt.s32.totalorder %s644_s15, %s644_s15 }
  0x1d   :  { %p651_p13 = por %p650_p12, %p649_p11 }
  0x1f   :  { %p652_p0 = pnand %p651_p13, %p645_p10 }
  0x21   :  { %655 = shalt.err (!%p652_p0)
}
  0x22   :  { %51 = dma.hbm_to_vmem [thread:$0]  %s819_s3, 1024, %s46_s11, [#allocation6], %s705_s27, %s705_s27, %s706_s28  }
  0x23   :  { %s709_s17 = smov [#allocation8]  }
  0x24   :  { %s59_s18 = sshll.u32 %s709_s17, 4  ;;  %s60_s18 = int_to_ptr.vmem [resolvable:$true] %s59_s18 }
  0x25   :  { %s664_s19 = scalar_lea.vmem %s60_s18, 1024  ;;  %p669_p2 = scmp.lt.s32.totalorder %s60_s18, %s60_s18 }
  0x26   :  { %p665_p1 = scmp.ne.s32.totalorder %s60_s18, %s664_s19  ;;  %p670_p3 = scmp.lt.s32.totalorder %s664_s19, %s664_s19 }
  0x28   :  { %p671_p4 = por %p670_p3, %p669_p2 }
  0x2a   :  { %p672_p5 = pnand %p671_p4, %p665_p1 }
  0x2c   :  { %675 = shalt.err (!%p672_p5)
}
  0x2d   :  { %65 = dma.hbm_to_vmem [thread:$0]  %s821_s5, 1024, %s60_s18, [#allocation9], %s705_s27, %s705_s27, %s706_s28  }
  0x2e   :  { %696 = dma.done.wait [#allocation3], 64  }
  0x2f   :  { %697 = vsyncadd [#allocation3], 4294967232 }
  0x30   :  { %698 = dma.done.wait [#allocation6], 2048  }
  0x31   :  { %699 = vsyncadd [#allocation6], 4294965248 }
  0x32   :  { %700 = dma.done.wait [#allocation9], 1024  }
  0x33   :  { %701 = vsyncadd [#allocation9], 4294966272  ;;  %v710_v0 = vmov 0.0   ;;  %vm711_vm0 = vmmov 0   ;;  %v568_v1 = vld [vmem:[#allocation5 + $0x38] sm:$0xff]   ;;  %v569_v2 = vld [vmem:[#allocation5 + $0x30] sm:$0xff]  }
  0x34   :  { %499 = vmatprep.subr.bf16.mxu0 %v710_v0  ;;  %515 = vmatprep.mubr.msk.bf16.mxu0 %vm711_vm0, %v710_v0  ;;  %v570_v3 = vld [vmem:[#allocation5 + $0x28] sm:$0xff]   ;;  %v576_v4 = vld [vmem:[#allocation7 + $0x38] sm:$0xff]   ;;  %v571_v5 = vld [vmem:[#allocation5 + $0x20] sm:$0xff]   ;;  %s712_s24 = smov [#allocation10]  }
  0x35   :  { %519 = vmatprep.subr.bf16.mxu1 %v710_v0  ;;  %535 = vmatprep.mubr.msk.bf16.mxu1 %vm711_vm0, %v710_v0  ;;  %v577_v6 = vld [vmem:[#allocation7 + $0x30] sm:$0xff]   ;;  %v572_v7 = vld [vmem:[#allocation5 + $0x18] sm:$0xff]   ;;  %v574_v9 = vld [vmem:[#allocation5 + $0x8] sm:$0xff]   ;;  %s434_s25 = sshll.u32 %s712_s24, 4  ;;  %s435_s25 = int_to_ptr.vmem [resolvable:$true] %s434_s25 }
  0x36   :  { %500 = vmatpush3.bf16.msra.mxu0 %v568_v1  ;;  %520 = vmatpush3.bf16.msra.mxu1 %v576_v4  ;;  %v573_v8 = vld [vmem:[#allocation5 + $0x10] sm:$0xff]   ;;  %v575_v10 = vld [vmem:[#allocation5] sm:$0xff]   ;;  %v81_v11 = vld [vmem:[#allocation2] sm:$0xf]  ;;  %p681_p7 = scmp.lt.s32.totalorder %s435_s25, %s435_s25 }
  0x37   :  { %501 = vmatprep.subr.bf16.mxu0 %v710_v0  ;;  %521 = vmatprep.subr.bf16.mxu1 %v710_v0  ;;  %v578_v12 = vld [vmem:[#allocation7 + $0x28] sm:$0xff]   ;;  %v579_v13 = vld [vmem:[#allocation7 + $0x20] sm:$0xff]   ;;  %v580_v14 = vld [vmem:[#allocation7 + $0x18] sm:$0xff]  }
  0x38   :  { %v581_v15 = vld [vmem:[#allocation7 + $0x10] sm:$0xff]   ;;  %v582_v16 = vld [vmem:[#allocation7 + $0x8] sm:$0xff]   ;;  %v583_v17 = vld [vmem:[#allocation7] sm:$0xff]  }
  0x39   :  { %v584_v18 = vld [vmem:[#allocation8 + $0x38] sm:$0xff]   ;;  %v585_v19 = vld [vmem:[#allocation8 + $0x30] sm:$0xff]   ;;  %v586_v32 = vld [vmem:[#allocation8 + $0x28] sm:$0xff]  }
  0x3a   :  { %502 = vmatpush3.bf16.msra.mxu0 %v569_v2  ;;  %522 = vmatpush3.bf16.msra.mxu1 %v577_v6  ;;  %v445_v20 = vld [vmem:[%s818_s2] ss:$0 sm:$0xff]  ;;  %v587_v33 = vld [vmem:[#allocation8 + $0x20] sm:$0xff]   ;;  %v589_v35 = vld [vmem:[#allocation8 + $0x10] sm:$0xff]  }
  0x3b   :  { %503 = vmatprep.subr.bf16.mxu0 %v710_v0  ;;  %523 = vmatprep.subr.bf16.mxu1 %v710_v0  ;;  %v588_v34 = vld [vmem:[#allocation8 + $0x18] sm:$0xff]   ;;  %v590_v36 = vld [vmem:[#allocation8 + $0x8] sm:$0xff]   ;;  %v591_v37 = vld [vmem:[#allocation8] sm:$0xff]  }
  0x3c   :  { %v454_v38 = vld [vmem:[%s820_s4] ss:$0 sm:$0xff]  ;;  %s676_s4 = scalar_lea.vmem %s435_s25, 128 }
  0x3d   :  { %v463_v50 = vld [vmem:[%s822_s6] ss:$0 sm:$0xff]  ;;  %p677_p6 = scmp.ne.s32.totalorder %s435_s25, %s676_s4  ;;  %p682_p8 = scmp.lt.s32.totalorder %s676_s4, %s676_s4 }
  0x3e   :  { %504 = vmatpush3.bf16.msra.mxu0 %v570_v3  ;;  %524 = vmatpush3.bf16.msra.mxu1 %v578_v12 }
  0x3f   :  { %505 = vmatprep.subr.bf16.mxu0 %v710_v0  ;;  %525 = vmatprep.subr.bf16.mxu1 %v710_v0  ;;  %p683_p9 = por %p682_p8, %p681_p7 }
  0x41   :  { %p684_p10 = pnand %p683_p9, %p677_p6 }
  0x42   :  { %506 = vmatpush3.bf16.msra.mxu0 %v571_v5  ;;  %526 = vmatpush3.bf16.msra.mxu1 %v579_v13 }
  0x43   :  { %507 = vmatprep.subr.bf16.mxu0 %v710_v0  ;;  %527 = vmatprep.subr.bf16.mxu1 %v710_v0 }
  0x46   :  { %508 = vmatpush3.bf16.msra.mxu0 %v572_v7  ;;  %528 = vmatpush3.bf16.msra.mxu1 %v580_v14 }
  0x47   :  { %509 = vmatprep.subr.bf16.mxu0 %v710_v0  ;;  %529 = vmatprep.subr.bf16.mxu1 %v710_v0 }
  0x4a   :  { %510 = vmatpush3.bf16.msra.mxu0 %v573_v8  ;;  %530 = vmatpush3.bf16.msra.mxu1 %v581_v15 }
  0x4b   :  { %511 = vmatprep.subr.bf16.mxu0 %v710_v0  ;;  %531 = vmatprep.subr.bf16.mxu1 %v710_v0 }
  0x4e   :  { %512 = vmatpush3.bf16.msra.mxu0 %v574_v9  ;;  %532 = vmatpush3.bf16.msra.mxu1 %v582_v16 }
  0x4f   :  { %513 = vmatprep.subr.bf16.mxu0 %v710_v0  ;;  %533 = vmatprep.subr.bf16.mxu1 %v710_v0 }
  0x52   :  { %514 = vmatpush3.bf16.msra.mxu0 %v575_v10  ;;  %534 = vmatpush3.bf16.msra.mxu1 %v583_v17 }
  0x53   :  { %539 = vmatprep.subr.bf16.mxu0 %v710_v0 }
  0x55   :  { %516 = vmatmul.mubr.bf16.vlgmr.msra.gmra.mxu0 %v81_v11 }
  0x56   :  { %555 = vmatprep.mubr.msk.bf16.mxu0 %vm711_vm0, %v710_v0  ;;  %540 = vmatpush3.bf16.msra.mxu0 %v584_v18 }
  0x57   :  { %541 = vmatprep.subr.bf16.mxu0 %v710_v0 }
  0x5a   :  { %542 = vmatpush3.bf16.msra.mxu0 %v585_v19 }
  0x5b   :  { %543 = vmatprep.subr.bf16.mxu0 %v710_v0 }
  0x5e   :  { %544 = vmatpush3.bf16.msra.mxu0 %v586_v32 }
  0x5f   :  { %545 = vmatprep.subr.bf16.mxu0 %v710_v0 }
  0x62   :  { %546 = vmatpush3.bf16.msra.mxu0 %v587_v33 }
  0x63   :  { %547 = vmatprep.subr.bf16.mxu0 %v710_v0 }
  0x66   :  { %548 = vmatpush3.bf16.msra.mxu0 %v588_v34 }
  0x67   :  { %549 = vmatprep.subr.bf16.mxu0 %v710_v0 }
  0x6a   :  { %550 = vmatpush3.bf16.msra.mxu0 %v589_v35 }
  0x6b   :  { %551 = vmatprep.subr.bf16.mxu0 %v710_v0 }
  0x6e   :  { %552 = vmatpush3.bf16.msra.mxu0 %v590_v36 }
  0x6f   :  { %553 = vmatprep.subr.bf16.mxu0 %v710_v0 }
  0x72   :  { %554 = vmatpush3.bf16.msra.mxu0 %v591_v37 }
 0x115   :  { %v187_v21 = vpop.f32.mrf.mxu0 }
 0x116   :  { %v188_v22 = vadd.f32 %v445_v20, %v187_v21 }
 0x117   :  { %v517_v23 = vpop.f32.mrf.mxu0 }
 0x118   :  { %v194_v24 = vmul.f32 0.70710677, %v188_v22  ;;  %v193_v28 = vmul.f32 0.5, %v188_v22 }
 0x119   :  { %v190_v25 = vpop.f32.mrf.mxu0 }
 0x11a   :  { %592 = verf.f32 %v194_v24 }
 0x11b   :  { %v518_v26 = vpop.f32.mrf.mxu0 }
 0x127   :  { %v593_v27 = vpop.eup %592 }
 0x128   :  { %v196_v29 = vadd.f32 1.0, %v593_v27 }
 0x12a   :  { %v197_v30 = vmul.f32 %v196_v29, %v193_v28 }
 0x12c   :  { %v198_v31 = vpack.c.bf16 %v197_v30, %v197_v30 }
 0x12e   :  { %536 = vmatmul.mubr.bf16.vlgmr.msra.gmra.mxu1 %v198_v31 }
 0x1ee   :  { %v304_v39 = vpop.f32.mrf.mxu1 }
 0x1ef   :  { %v305_v40 = vadd.f32 %v454_v38, %v304_v39 }
 0x1f0   :  { %v537_v41 = vpop.f32.mrf.mxu1 }
 0x1f1   :  { %v311_v42 = vmul.f32 0.70710677, %v305_v40  ;;  %v310_v46 = vmul.f32 0.5, %v305_v40 }
 0x1f2   :  { %v307_v43 = vpop.f32.mrf.mxu1 }
 0x1f3   :  { %594 = verf.f32 %v311_v42 }
 0x1f4   :  { %v538_v44 = vpop.f32.mrf.mxu1 }
 0x200   :  { %v595_v45 = vpop.eup %594 }
 0x201   :  { %v313_v47 = vadd.f32 1.0, %v595_v45 }
 0x203   :  { %v314_v48 = vmul.f32 %v313_v47, %v310_v46 }
 0x205   :  { %v315_v49 = vpack.c.bf16 %v314_v48, %v314_v48 }
 0x207   :  { %556 = vmatmul.mubr.bf16.vlgmr.msra.gmra.mxu0 %v315_v49 }
 0x2c7   :  { %v421_v51 = vpop.f32.mrf.mxu0 }
 0x2c8   :  { %v422_v52 = vadd.f32 %v463_v50, %v421_v51 }
 0x2c9   :  { %v557_v53 = vpop.f32.mrf.mxu0 }
 0x2ca   :  { %427 = vst [vmem:[#allocation10] sm:$0xff] %v422_v52 }
 0x2cb   :  { %v424_v54 = vpop.f32.mrf.mxu0 }
 0x2cc   :  { %687 = shalt.err (!%p684_p10)
}
 0x2cd   :  { %437 = dma.vmem_to_hbm [thread:$0]  %s435_s25, 128, %s823_s7, [#allocation4]   ;;  %v558_v55 = vpop.f32.mrf.mxu0 }
 0x2ce   :  { %702 = dma.done.wait [#allocation4], 128  }
 0x2cf   :  { %703 = vsyncadd [#allocation4], 4294967168 }
 0x2d0   :  { %441 = vsyncpa [#allocation3], 1 }
 0x2d1   :  { %442 = vsyncpa [#allocation6], 1 }
 0x2d2   :  { %443 = vsyncpa [#allocation9], 1 }
 0x2d3   :  { %444 = vsyncpa [#allocation4], 1 }

// kernel: tpu_custom_call.1
= control target key start
LH: loop header
LB: loop body
LE: loop exit
PB: predicated region body
PF: predicated region fallthrough
CT: control target
= control target key end

     0   :  { %12 = vsyncpa [#allocation3], 0  ;;  %s816_s0 = inlined_call_operand.hbm [shape: bf16[8,128], index: 0, kind: input, shape index: {}]   ;;  %s817_s1 = inlined_call_operand.hbm [shape: bf16[128,128], index: 1, kind: input, shape index: {}]   ;;  %s818_s2 = inlined_call_operand.vmem [shape: f32[1,128], index: 2, kind: input, shape index: {}]   ;;  %s819_s3 = inlined_call_operand.hbm [shape: bf16[128,128], index: 3, kind: input, shape index: {}]   ;;  %s820_s4 = inlined_call_operand.vmem [shape: f32[1,128], index: 4, kind: input, shape index: {}]   ;;  %s821_s5 = inlined_call_operand.hbm [shape: bf16[128,128], index: 5, kind: input, shape index: {}]   ;;  %s822_s6 = inlined_call_operand.vmem [shape: f32[1,128], index: 6, kind: input, shape index: {}]   ;;  %s823_s7 = inlined_call_operand.hbm [shape: f32[8,128], index: 7, kind: output, shape index: {}]  }
   0x1   :  { %13 = vsyncpa [#allocation6], 0 }
   0x2   :  { %14 = vsyncpa [#allocation9], 0 }
   0x3   :  { %15 = vsyncpa [#allocation4], 0  ;;  %s704_s24 = smov [#allocation5]  }
   0x4   :  { %s31_s25 = sshll.u32 %s704_s24, 4  ;;  %s32_s25 = int_to_ptr.vmem [resolvable:$true] %s31_s25 }
   0x5   :  { %s604_s26 = scalar_lea.vmem %s32_s25, 1024  ;;  %p609_p1 = scmp.lt.s32.totalorder %s32_s25, %s32_s25 }
   0x6   :  { %p605_p0 = scmp.ne.s32.totalorder %s32_s25, %s604_s26  ;;  %p610_p2 = scmp.lt.s32.totalorder %s604_s26, %s604_s26 }
   0x8   :  { %p611_p3 = por %p610_p2, %p609_p1 }
   0xa   :  { %p612_p4 = pnand %p611_p3, %p605_p0 }
   0xc   :  { %615 = shalt.err (!%p612_p4)
}
   0xd   :  { %s705_s27 = smov 64   ;;  %s706_s28 = smov 4  }
   0xe   :  { %37 = dma.hbm_to_vmem [thread:$0]  %s817_s1, 1024, %s32_s25, [#allocation6], %s705_s27, %s705_s27, %s706_s28  }
   0xf   :  { %s707_s8 = smov [#allocation2]   ;;  %s708_s10 = smov [#allocation7]  }
  0x10   :  { %s22_s9 = sshll.u32 %s707_s8, 4  ;;  %s45_s11 = sshll.u32 %s708_s10, 4  ;;  %s23_s9 = int_to_ptr.vmem [resolvable:$true] %s22_s9  ;;  %s46_s11 = int_to_ptr.vmem [resolvable:$true] %s45_s11 }
  0x11   :  { %s624_s12 = scalar_lea.vmem %s23_s9, 64  ;;  %p629_p6 = scmp.lt.s32.totalorder %s23_s9, %s23_s9 }
  0x12   :  { %p625_p5 = scmp.ne.s32.totalorder %s23_s9, %s624_s12  ;;  %p630_p7 = scmp.lt.s32.totalorder %s624_s12, %s624_s12 }
  0x14   :  { %p631_p8 = por %p630_p7, %p629_p6 }
  0x16   :  { %p632_p9 = pnand %p631_p8, %p625_p5 }
  0x18   :  { %635 = shalt.err (!%p632_p9)
}
  0x19   :  { %25 = dma.hbm_to_vmem [thread:$0]  %s816_s0, 64, %s23_s9, [#allocation3]  }
  0x1a   :  { %s644_s15 = scalar_lea.vmem %s46_s11, 1024  ;;  %p649_p11 = scmp.lt.s32.totalorder %s46_s11, %s46_s11 }
  0x1b   :  { %p645_p10 = scmp.ne.s32.totalorder %s46_s11, %s644_s15  ;;  %p650_p12 = scmp.lt.s32.totalorder %s644_s15, %s644_s15 }
  0x1d   :  { %p651_p13 = por %p650_p12, %p649_p11 }
  0x1f   :  { %p652_p0 = pnand %p651_p13, %p645_p10 }
  0x21   :  { %655 = shalt.err (!%p652_p0)
}
  0x22   :  { %51 = dma.hbm_to_vmem [thread:$0]  %s819_s3, 1024, %s46_s11, [#allocation6], %s705_s27, %s705_s27, %s706_s28  }
  0x23   :  { %s709_s17 = smov [#allocation8]  }
  0x24   :  { %s59_s18 = sshll.u32 %s709_s17, 4  ;;  %s60_s18 = int_to_ptr.vmem [resolvable:$true] %s59_s18 }
  0x25   :  { %s664_s19 = scalar_lea.vmem %s60_s18, 1024  ;;  %p669_p2 = scmp.lt.s32.totalorder %s60_s18, %s60_s18 }
  0x26   :  { %p665_p1 = scmp.ne.s32.totalorder %s60_s18, %s664_s19  ;;  %p670_p3 = scmp.lt.s32.totalorder %s664_s19, %s664_s19 }
  0x28   :  { %p671_p4 = por %p670_p3, %p669_p2 }
  0x2a   :  { %p672_p5 = pnand %p671_p4, %p665_p1 }
  0x2c   :  { %675 = shalt.err (!%p672_p5)
}
  0x2d   :  { %65 = dma.hbm_to_vmem [thread:$0]  %s821_s5, 1024, %s60_s18, [#allocation9], %s705_s27, %s705_s27, %s706_s28  }
  0x2e   :  { %696 = dma.done.wait [#allocation3], 64  }
  0x2f   :  { %697 = vsyncadd [#allocation3], 4294967232 }
  0x30   :  { %698 = dma.done.wait [#allocation6], 2048  }
  0x31   :  { %699 = vsyncadd [#allocation6], 4294965248 }
  0x32   :  { %700 = dma.done.wait [#allocation9], 1024  }
  0x33   :  { %701 = vsyncadd [#allocation9], 4294966272  ;;  %v710_v0 = vmov 0.0   ;;  %vm711_vm0 = vmmov 0   ;;  %v568_v1 = vld [vmem:[#allocation5 + $0x38] sm:$0xff]   ;;  %v569_v2 = vld [vmem:[#allocation5 + $0x30] sm:$0xff]  }
  0x34   :  { %499 = vmatprep.subr.bf16.mxu0 %v710_v0  ;;  %515 = vmatprep.mubr.msk.bf16.mxu0 %vm711_vm0, %v710_v0  ;;  %v570_v3 = vld [vmem:[#allocation5 + $0x28] sm:$0xff]   ;;  %v576_v4 = vld [vmem:[#allocation7 + $0x38] sm:$0xff]   ;;  %v571_v5 = vld [vmem:[#allocation5 + $0x20] sm:$0xff]   ;;  %s712_s24 = smov [#allocation10]  }
  0x35   :  { %519 = vmatprep.subr.bf16.mxu1 %v710_v0  ;;  %535 = vmatprep.mubr.msk.bf16.mxu1 %vm711_vm0, %v710_v0  ;;  %v577_v6 = vld [vmem:[#allocation7 + $0x30] sm:$0xff]   ;;  %v572_v7 = vld [vmem:[#allocation5 + $0x18] sm:$0xff]   ;;  %v574_v9 = vld [vmem:[#allocation5 + $0x8] sm:$0xff]   ;;  %s434_s25 = sshll.u32 %s712_s24, 4  ;;  %s435_s25 = int_to_ptr.vmem [resolvable:$true] %s434_s25 }
  0x36   :  { %500 = vmatpush3.bf16.msra.mxu0 %v568_v1  ;;  %520 = vmatpush3.bf16.msra.mxu1 %v576_v4  ;;  %v573_v8 = vld [vmem:[#allocation5 + $0x10] sm:$0xff]   ;;  %v575_v10 = vld [vmem:[#allocation5] sm:$0xff]   ;;  %v81_v11 = vld [vmem:[#allocation2] sm:$0xf]  ;;  %p681_p7 = scmp.lt.s32.totalorder %s435_s25, %s435_s25 }
  0x37   :  { %501 = vmatprep.subr.bf16.mxu0 %v710_v0  ;;  %521 = vmatprep.subr.bf16.mxu1 %v710_v0  ;;  %v578_v12 = vld [vmem:[#allocation7 + $0x28] sm:$0xff]   ;;  %v579_v13 = vld [vmem:[#allocation7 + $0x20] sm:$0xff]   ;;  %v580_v14 = vld [vmem:[#allocation7 + $0x18] sm:$0xff]  }
  0x38   :  { %v581_v15 = vld [vmem:[#allocation7 + $0x10] sm:$0xff]   ;;  %v582_v16 = vld [vmem:[#allocation7 + $0x8] sm:$0xff]   ;;  %v583_v17 = vld [vmem:[#allocation7] sm:$0xff]  }
  0x39   :  { %v584_v18 = vld [vmem:[#allocation8 + $0x38] sm:$0xff]   ;;  %v585_v19 = vld [vmem:[#allocation8 + $0x30] sm:$0xff]   ;;  %v586_v32 = vld [vmem:[#allocation8 + $0x28] sm:$0xff]  }
  0x3a   :  { %502 = vmatpush3.bf16.msra.mxu0 %v569_v2  ;;  %522 = vmatpush3.bf16.msra.mxu1 %v577_v6  ;;  %v445_v20 = vld [vmem:[%s818_s2] ss:$0 sm:$0xff]  ;;  %v587_v33 = vld [vmem:[#allocation8 + $0x20] sm:$0xff]   ;;  %v589_v35 = vld [vmem:[#allocation8 + $0x10] sm:$0xff]  }
  0x3b   :  { %503 = vmatprep.subr.bf16.mxu0 %v710_v0  ;;  %523 = vmatprep.subr.bf16.mxu1 %v710_v0  ;;  %v588_v34 = vld [vmem:[#allocation8 + $0x18] sm:$0xff]   ;;  %v590_v36 = vld [vmem:[#allocation8 + $0x8] sm:$0xff]   ;;  %v591_v37 = vld [vmem:[#allocation8] sm:$0xff]  }
  0x3c   :  { %v454_v38 = vld [vmem:[%s820_s4] ss:$0 sm:$0xff]  ;;  %s676_s4 = scalar_lea.vmem %s435_s25, 128 }
  0x3d   :  { %v463_v50 = vld [vmem:[%s822_s6] ss:$0 sm:$0xff]  ;;  %p677_p6 = scmp.ne.s32.totalorder %s435_s25, %s676_s4  ;;  %p682_p8 = scmp.lt.s32.totalorder %s676_s4, %s676_s4 }
  0x3e   :  { %504 = vmatpush3.bf16.msra.mxu0 %v570_v3  ;;  %524 = vmatpush3.bf16.msra.mxu1 %v578_v12 }
  0x3f   :  { %505 = vmatprep.subr.bf16.mxu0 %v710_v0  ;;  %525 = vmatprep.subr.bf16.mxu1 %v710_v0  ;;  %p683_p9 = por %p682_p8, %p681_p7 }
  0x41   :  { %p684_p10 = pnand %p683_p9, %p677_p6 }
  0x42   :  { %506 = vmatpush3.bf16.msra.mxu0 %v571_v5  ;;  %526 = vmatpush3.bf16.msra.mxu1 %v579_v13 }
  0x43   :  { %507 = vmatprep.subr.bf16.mxu0 %v710_v0  ;;  %527 = vmatprep.subr.bf16.mxu1 %v710_v0 }
  0x46   :  { %508 = vmatpush3.bf16.msra.mxu0 %v572_v7  ;;  %528 = vmatpush3.bf16.msra.mxu1 %v580_v14 }
  0x47   :  { %509 = vmatprep.subr.bf16.mxu0 %v710_v0  ;;  %529 = vmatprep.subr.bf16.mxu1 %v710_v0 }
  0x4a   :  { %510 = vmatpush3.bf16.msra.mxu0 %v573_v8  ;;  %530 = vmatpush3.bf16.msra.mxu1 %v581_v15 }
  0x4b   :  { %511 = vmatprep.subr.bf16.mxu0 %v710_v0  ;;  %531 = vmatprep.subr.bf16.mxu1 %v710_v0 }
  0x4e   :  { %512 = vmatpush3.bf16.msra.mxu0 %v574_v9  ;;  %532 = vmatpush3.bf16.msra.mxu1 %v582_v16 }
  0x4f   :  { %513 = vmatprep.subr.bf16.mxu0 %v710_v0  ;;  %533 = vmatprep.subr.bf16.mxu1 %v710_v0 }
  0x52   :  { %514 = vmatpush3.bf16.msra.mxu0 %v575_v10  ;;  %534 = vmatpush3.bf16.msra.mxu1 %v583_v17 }
  0x53   :  { %539 = vmatprep.subr.bf16.mxu0 %v710_v0 }
  0x55   :  { %516 = vmatmul.mubr.bf16.vlgmr.msra.gmra.mxu0 %v81_v11 }
  0x56   :  { %555 = vmatprep.mubr.msk.bf16.mxu0 %vm711_vm0, %v710_v0  ;;  %540 = vmatpush3.bf16.msra.mxu0 %v584_v18 }
  0x57   :  { %541 = vmatprep.subr.bf16.mxu0 %v710_v0 }
  0x5a   :  { %542 = vmatpush3.bf16.msra.mxu0 %v585_v19 }
  0x5b   :  { %543 = vmatprep.subr.bf16.mxu0 %v710_v0 }
  0x5e   :  { %544 = vmatpush3.bf16.msra.mxu0 %v586_v32 }
  0x5f   :  { %545 = vmatprep.subr.bf16.mxu0 %v710_v0 }
  0x62   :  { %546 = vmatpush3.bf16.msra.mxu0 %v587_v33 }
  0x63   :  { %547 = vmatprep.subr.bf16.mxu0 %v710_v0 }
  0x66   :  { %548 = vmatpush3.bf16.msra.mxu0 %v588_v34 }
  0x67   :  { %549 = vmatprep.subr.bf16.mxu0 %v710_v0 }
  0x6a   :  { %550 = vmatpush3.bf16.msra.mxu0 %v589_v35 }
  0x6b   :  { %551 = vmatprep.subr.bf16.mxu0 %v710_v0 }
  0x6e   :  { %552 = vmatpush3.bf16.msra.mxu0 %v590_v36 }
  0x6f   :  { %553 = vmatprep.subr.bf16.mxu0 %v710_v0 }
  0x72   :  { %554 = vmatpush3.bf16.msra.mxu0 %v591_v37 }
 0x115   :  { %v187_v21 = vpop.f32.mrf.mxu0 }
 0x116   :  { %v188_v22 = vadd.f32 %v445_v20, %v187_v21 }
 0x117   :  { %v517_v23 = vpop.f32.mrf.mxu0 }
 0x118   :  { %v194_v24 = vmul.f32 0.70710677, %v188_v22  ;;  %v193_v28 = vmul.f32 0.5, %v188_v22 }
 0x119   :  { %v190_v25 = vpop.f32.mrf.mxu0 }
 0x11a   :  { %592 = verf.f32 %v194_v24 }
 0x11b   :  { %v518_v26 = vpop.f32.mrf.mxu0 }
 0x127   :  { %v593_v27 = vpop.eup %592 }
 0x128   :  { %v196_v29 = vadd.f32 1.0, %v593_v27 }
 0x12a   :  { %v197_v30 = vmul.f32 %v196_v29, %v193_v28 }
 0x12c   :  { %v198_v31 = vpack.c.bf16 %v197_v30, %v197_v30 }
 0x12e   :  { %536 = vmatmul.mubr.bf16.vlgmr.msra.gmra.mxu1 %v198_v31 }
 0x1ee   :  { %v304_v39 = vpop.f32.mrf.mxu1 }
 0x1ef   :  { %v305_v40 = vadd.f32 %v454_v38, %v304_v39 }
 0x1f0   :  { %v537_v41 = vpop.f32.mrf.mxu1 }
 0x1f1   :  { %v311_v42 = vmul.f32 0.70710677, %v305_v40  ;;  %v310_v46 = vmul.f32 0.5, %v305_v40 }
 0x1f2   :  { %v307_v43 = vpop.f32.mrf.mxu1 }
 0x1f3   :  { %594 = verf.f32 %v311_v42 }
 0x1f4   :  { %v538_v44 = vpop.f32.mrf.mxu1 }
 0x200   :  { %v595_v45 = vpop.eup %594 }
 0x201   :  { %v313_v47 = vadd.f32 1.0, %v595_v45 }
 0x203   :  { %v314_v48 = vmul.f32 %v313_v47, %v310_v46 }
 0x205   :  { %v315_v49 = vpack.c.bf16 %v314_v48, %v314_v48 }
 0x207   :  { %556 = vmatmul.mubr.bf16.vlgmr.msra.gmra.mxu0 %v315_v49 }
 0x2c7   :  { %v421_v51 = vpop.f32.mrf.mxu0 }
 0x2c8   :  { %v422_v52 = vadd.f32 %v463_v50, %v421_v51 }
 0x2c9   :  { %v557_v53 = vpop.f32.mrf.mxu0 }
 0x2ca   :  { %427 = vst [vmem:[#allocation10] sm:$0xff] %v422_v52 }
 0x2cb   :  { %v424_v54 = vpop.f32.mrf.mxu0 }
 0x2cc   :  { %687 = shalt.err (!%p684_p10)
}
 0x2cd   :  { %437 = dma.vmem_to_hbm [thread:$0]  %s435_s25, 128, %s823_s7, [#allocation4]   ;;  %v558_v55 = vpop.f32.mrf.mxu0 }
 0x2ce   :  { %702 = dma.done.wait [#allocation4], 128  }
 0x2cf   :  { %703 = vsyncadd [#allocation4], 4294967168 }
 0x2d0   :  { %441 = vsyncpa [#allocation3], 1 }
 0x2d1   :  { %442 = vsyncpa [#allocation6], 1 }
 0x2d2   :  { %443 = vsyncpa [#allocation9], 1 }
 0x2d3   :  { %444 = vsyncpa [#allocation4], 1 }

</bundles_post_ra>
